<compile_context>
chip_gen: v7x
topology: tpu7x:2x2x1
jax: 0.10.0
libtpu: 0.0.40
codegen_flags: <defaults>
</compile_context>

<pallas_src>
import functools

import jax
import jax.numpy as jnp
from jax import lax
from jax.experimental import pallas as pl
from jax.experimental.pallas import tpu as pltpu


def _static_pow(x, gamma):
    """(1 - p_t) ** gamma with compile-time gamma; integer gamma -> VPU multiplies."""
    g = float(gamma)
    if g == 0.0:
        return jnp.ones_like(x)
    if g.is_integer() and 1.0 <= g <= 8.0:
        acc = x
        for _ in range(int(g) - 1):
            acc = acc * x
        return acc
    return jnp.power(x, g)  # falls back to EUP exp/log path


def _focal_loss_kernel(logits_ref, targets_ref, wt_ref, w_ref, out_ref, *,
                       label_smoothing, alpha, gamma, reduction,
                       num_classes, tile_n, n_rows):
    x = logits_ref[...].astype(jnp.float32)      # (T, C)  f32 math inside the kernel
    t = targets_ref[...]                         # (T, 1)  int32 class index
    wt = wt_ref[...]                             # (T, 1)  f32 weight[target] (wrapper gather)
    w = w_ref[...]                               # (1, C)  f32 class weights

    tn, c = x.shape

    # Numerically stable log-sum-exp over the class axis (XLU max + EUP exp + XLU sum).
    m = jnp.max(x, axis=-1, keepdims=True)                                  # (T, 1)
    lse = m + jnp.log(jnp.sum(jnp.exp(x - m), axis=-1, keepdims=True))      # (T, 1)

    # Logit of the target class via a fused select-reduce (no one-hot temporary).
    cls = lax.broadcasted_iota(jnp.int32, (tn, c), 1)
    x_t = jnp.sum(jnp.where(cls == t, x, 0.0), axis=-1, keepdims=True)      # (T, 1)

    # PyTorch cross_entropy(reduction='none', weight, label_smoothing) in x/lse form:
    #   nll_n    = weight[t_n] * (lse_n - x[n, t_n])
    #   smooth_n = sum_c w_c * (lse_n - x[n, c]) = lse_n * sum(w) - (x @ w)
    nll = wt * (lse - x_t)                                                  # (T, 1)
    eps = label_smoothing
    if eps != 0.0:
        # x @ w as an MXU matvec ('trans_b' contraction over the class/lane axis):
        # frees an XLU lane-reduction slot and avoids a weighted (T, C) temporary.
        wx = lax.dot_general(x, w, (((1,), (1,)), ((), ())),
                             preferred_element_type=jnp.float32)            # (T, 1)
        smooth = lse * jnp.sum(w) - wx
        ce = (1.0 - eps) * nll + (eps / num_classes) * smooth               # (T, 1)
    else:
        ce = nll

    # Focal modulation (matches the module: p_t = exp(-ce) with ce already weighted/smoothed).
    p_t = jnp.exp(-ce)
    fl = alpha * _static_pow(1.0 - p_t, gamma) * ce                         # (T, 1)

    if reduction == "none":
        # Partial last block: out-of-range rows are clipped on writeback by Pallas.
        # (See lane-dense TODO at the top of the file.)
        out_ref[...] = fl.astype(out_ref.dtype)
    else:
        # Mask padded rows of the last tile out of the partial sum. Keep this a
        # select (not multiply-by-mask) so garbage/NaN rows cannot leak into the sum.
        row = pl.program_id(0) * tile_n + lax.broadcasted_iota(jnp.int32, (tn, 1), 0)
        fl = jnp.where(row < n_rows, fl, 0.0)
        s = jnp.sum(fl)
        # Lane-dense (1, 1, 128) partial-sum block (unmasked store); wrapper reads [:, 0, 0].
        out_ref[...] = jnp.full(out_ref.shape, s, dtype=out_ref.dtype)


def _vmem_capacity_bytes():
    """Physical VMEM per TensorCore; conservative 64 MiB (v7x) fallback."""
    try:
        info = pltpu.get_tpu_info()
        cap = getattr(info, "vmem_capacity_bytes", None)
        if cap:
            return int(cap)
    except Exception:
        pass
    return 64 * 1024 * 1024


def _choose_tile_n(n, c, itemsize, nbuf, vmem_budget_bytes):
    """Row-tile size from the actual per-step working set against the VMEM budget."""
    align = 8 if itemsize >= 4 else 16          # bf16 packs 16 rows per vreg
    # Per-row bytes per grid step:
    #   nbuf pipelined native-dtype logits rows
    # + ~4 (T, C) f32-sized temporaries (f32 upcast, exp(x-m), class iota, select)
    # + small (T, 1) columns (targets, wt, lse, x_t, ce, ...) and the matvec output.
    per_row = c * (nbuf * itemsize + 4 * 4) + 64 * 4
    t = int(vmem_budget_bytes // max(per_row, 1))
    t = min(t, 32768)                           # keep per-step latency bounded
    t -= t % align
    t = max(t, align)
    if t >= n:
        if n >= 2 * align:
            # Keep at least two tiles so a v7x megacore can run one per TensorCore
            # ('parallel' axis); near-zero cost on single-TC v5e / v6e.
            half = -(-n // 2)                   # ceil(n / 2)
            half += (-half) % align             # round up to alignment
            t = min(half, t)
        else:
            t = n                               # single full block (== full dim is allowed)
    return t


def focal_loss(inputs, targets, weight=None, label_smoothing=0.0,
               alpha=1.0, gamma=2.0, reduction="mean", logits_buffers=2):
    if reduction not in {"mean", "none", "sum"}:
        raise ValueError("'reduction' must be one of {'mean', 'none', 'sum'}")

    n, c = inputs.shape
    if weight is None:
        w1d = jnp.ones((c,), jnp.float32)
    else:
        w1d = jnp.asarray(weight).reshape(c).astype(jnp.float32)
    w_row = w1d.reshape(1, c)
    t_i32 = targets.astype(jnp.int32)
    t2 = t_i32.reshape(n, 1)
    # weight[target]: trivial XLA gather outside the kernel (review item 4).
    wt = jnp.take(w1d, t_i32).reshape(n, 1)

    nbuf = max(2, int(logits_buffers))
    vmem_cap = _vmem_capacity_bytes()
    vmem_budget = (vmem_cap * 3) // 8           # target for all pipelined buffers + temps
    vmem_limit = min((vmem_cap * 3) // 4, vmem_budget + (16 << 20))

    tile_n = _choose_tile_n(n, c, inputs.dtype.itemsize, nbuf, vmem_budget)
    num_tiles = pl.cdiv(n, tile_n)
    grid = (num_tiles,)

    logits_kwargs = {}
    if nbuf > 2:
        # Optional deeper pipelining for the one big streamed input (review item 8).
        logits_kwargs["pipeline_mode"] = pl.Buffered(nbuf)

    in_specs = [
        pl.BlockSpec((tile_n, c), lambda i: (i, 0), **logits_kwargs),  # logits (native dtype DMA)
        pl.BlockSpec((tile_n, 1), lambda i: (i, 0)),                   # targets
        pl.BlockSpec((tile_n, 1), lambda i: (i, 0)),                   # weight[target]
        pl.BlockSpec((1, c), lambda i: (0, 0)),                        # class weights (constant)
    ]

    if reduction == "none":
        out_shape = jax.ShapeDtypeStruct((n, 1), jnp.float32)
        out_specs = pl.BlockSpec((tile_n, 1), lambda i: (i, 0))
        out_bytes = n * 4
    else:
        out_shape = jax.ShapeDtypeStruct((num_tiles, 1, 128), jnp.float32)
        out_specs = pl.BlockSpec((1, 1, 128), lambda i: (i, 0, 0))
        out_bytes = num_tiles * 128 * 4

    cost = pl.CostEstimate(
        flops=10 * n * c,
        transcendentals=n * c + 4 * n,
        bytes_accessed=n * c * inputs.dtype.itemsize + 8 * n + 4 * c + out_bytes,
    )

    kern = functools.partial(
        _focal_loss_kernel,
        label_smoothing=float(label_smoothing),
        alpha=float(alpha),
        gamma=float(gamma),
        reduction=reduction,
        num_classes=c,
        tile_n=tile_n,
        n_rows=n,
    )

    out = pl.pallas_call(
        kern,
        out_shape=out_shape,
        grid=grid,
        in_specs=in_specs,
        out_specs=out_specs,
        compiler_params=pltpu.CompilerParams(
            dimension_semantics=("parallel",),
            vmem_limit_bytes=int(vmem_limit),
        ),
        cost_estimate=cost,
    )(inputs, t2, wt, w_row)

    if reduction == "none":
        return out[:, 0]
    total = jnp.sum(out[:, 0, 0])
    if reduction == "mean":
        return total / n          # module calls loss_value.mean() -> divide by N
    return total


def _focal_loss_ref(inputs, targets, weight=None, label_smoothing=0.0,
                    alpha=1.0, gamma=2.0, reduction="mean"):
    """Pure-JAX reference mirroring the PyTorch module's forward."""
    x = inputs.astype(jnp.float32)
    n, c = x.shape
    w = jnp.ones((c,), jnp.float32) if weight is None else jnp.asarray(weight).astype(jnp.float32)
    lp = jax.nn.log_softmax(x, axis=-1)
    onehot = jax.nn.one_hot(targets, c, dtype=jnp.float32)
    nll = -jnp.sum(onehot * w[None, :] * lp, axis=-1)
    smooth = -jnp.sum(w[None, :] * lp, axis=-1)
    eps = float(label_smoothing)
    ce = (1.0 - eps) * nll + (eps / c) * smooth
    p_t = jnp.exp(-ce)
    fl = alpha * (1.0 - p_t) ** gamma * ce
    if reduction == "mean":
        return jnp.mean(fl)
    if reduction == "sum":
        return jnp.sum(fl)
    return fl


if __name__ == "__main__":
    key = jax.random.PRNGKey(0)
    k_logits, k_targets = jax.random.split(key)

    N, C = 8, 16
    logits = jax.random.normal(k_logits, (N, C), dtype=jnp.float32)
    targets = jax.random.randint(k_targets, (N,), 0, C, dtype=jnp.int32)
    # Deterministic per-class weights (synthetic, not a checkpoint load).
    weight = jnp.linspace(0.5, 1.5, C, dtype=jnp.float32)

    for red in ("mean", "none", "sum"):
        out = focal_loss(logits, targets, weight=weight,
                         label_smoothing=0.1, alpha=1.0, gamma=2.0, reduction=red)
        jax.block_until_ready(out)
        ref = _focal_loss_ref(logits, targets, weight=weight,
                              label_smoothing=0.1, alpha=1.0, gamma=2.0, reduction=red)
        assert jnp.allclose(out, ref, rtol=5e-3, atol=5e-3), (red, out, ref)

    # bf16 logits path: native-dtype DMA (half the HBM reads), f32 math in-kernel.
    x16 = logits.astype(jnp.bfloat16)
    out16 = focal_loss(x16, targets, weight=weight,
                       label_smoothing=0.1, alpha=1.0, gamma=2.0, reduction="sum")
    jax.block_until_ready(out16)
    ref16 = _focal_loss_ref(x16, targets, weight=weight,
                            label_smoothing=0.1, alpha=1.0, gamma=2.0, reduction="sum")
    assert jnp.allclose(out16, ref16, rtol=5e-3, atol=5e-3), (out16, ref16)

    # Unweighted / no-smoothing path (eps == 0 skips the MXU matvec at compile time).
    out0 = focal_loss(logits, targets, weight=None, label_smoothing=0.0,
                      alpha=0.25, gamma=2.0, reduction="mean")
    jax.block_until_ready(out0)
    ref0 = _focal_loss_ref(logits, targets, weight=None, label_smoothing=0.0,
                           alpha=0.25, gamma=2.0, reduction="mean")
    assert jnp.allclose(out0, ref0, rtol=5e-3, atol=5e-3), (out0, ref0)

    print("KERNEL_OK")
</pallas_src>

<mosaic_0001>
module attributes {stable_mosaic.version = 11 : i64} {
  func.func @_focal_loss_kernel(%arg0: i32, %arg1: memref<8x16xf32, #tpu.memory_space<vmem>>, %arg2: memref<8x1xi32, #tpu.memory_space<vmem>>, %arg3: memref<8x1xf32, #tpu.memory_space<vmem>>, %arg4: memref<1x16xf32, #tpu.memory_space<vmem>>, %arg5: memref<1x1x128xf32, #tpu.memory_space<vmem>>) attributes {dimension_semantics = [#tpu.dimension_semantics<parallel>], iteration_bounds = array<i64: 1>, scalar_prefetch = 0 : i64, scratch_operands = 0 : i64, tpu.core_type = #tpu.core_type<tc>, window_params = [{transform_indices = @transform_0, window_bounds = array<i64: 8, 16>}, {transform_indices = @transform_1, window_bounds = array<i64: 8, 1>}, {transform_indices = @transform_2, window_bounds = array<i64: 8, 1>}, {pipeline_mode = #tpu.pipeline_mode<synchronous>, transform_indices = @transform_3, window_bounds = array<i64: 1, 16>}, {transform_indices = @transform_4, window_bounds = array<i64: 1, 1, 128>}]} {
    %c0 = arith.constant 0 : index
    %c0_0 = arith.constant 0 : index
    %0 = vector.load %arg1[%c0, %c0_0] : memref<8x16xf32, #tpu.memory_space<vmem>>, vector<8x16xf32>
    %c0_1 = arith.constant 0 : index
    %c0_2 = arith.constant 0 : index
    %1 = vector.load %arg2[%c0_1, %c0_2] : memref<8x1xi32, #tpu.memory_space<vmem>>, vector<8x1xi32>
    %c0_3 = arith.constant 0 : index
    %c0_4 = arith.constant 0 : index
    %2 = vector.load %arg3[%c0_3, %c0_4] : memref<8x1xf32, #tpu.memory_space<vmem>>, vector<8x1xf32>
    %c0_5 = arith.constant 0 : index
    %c0_6 = arith.constant 0 : index
    %3 = vector.load %arg4[%c0_5, %c0_6] : memref<1x16xf32, #tpu.memory_space<vmem>>, vector<1x16xf32>
    %cst = arith.constant dense<0xFF800000> : vector<8xf32>
    %4 = vector.multi_reduction <maximumf>, %0, %cst [1] : vector<8x16xf32> to vector<8xf32>
    %5 = vector.shape_cast %4 : vector<8xf32> to vector<8x1xf32>
    %6 = vector.broadcast %5 : vector<8x1xf32> to vector<8x16xf32>
    %7 = arith.subf %0, %6 : vector<8x16xf32>
    %8 = math.exp %7 : vector<8x16xf32>
    %cst_7 = arith.constant dense<0.000000e+00> : vector<8xf32>
    %9 = vector.multi_reduction <add>, %8, %cst_7 [1] : vector<8x16xf32> to vector<8xf32>
    %10 = vector.shape_cast %9 : vector<8xf32> to vector<8x1xf32>
    %11 = math.log %10 : vector<8x1xf32>
    %12 = arith.addf %5, %11 : vector<8x1xf32>
    %13 = tpu.iota {dimensions = array<i32: 1>} : vector<8x16xi32>
    %14 = vector.broadcast %1 : vector<8x1xi32> to vector<8x16xi32>
    %15 = arith.cmpi eq, %13, %14 : vector<8x16xi32>
    %cst_8 = arith.constant 0.000000e+00 : f32
    %16 = vector.broadcast %cst_8 : f32 to vector<8x16xf32>
    %17 = arith.select %15, %0, %16 : vector<8x16xi1>, vector<8x16xf32>
    %cst_9 = arith.constant dense<0.000000e+00> : vector<8xf32>
    %18 = vector.multi_reduction <add>, %17, %cst_9 [1] : vector<8x16xf32> to vector<8xf32>
    %19 = vector.shape_cast %18 : vector<8xf32> to vector<8x1xf32>
    %20 = arith.subf %12, %19 : vector<8x1xf32>
    %21 = arith.mulf %2, %20 : vector<8x1xf32>
    %cst_10 = arith.constant dense<0.000000e+00> : vector<8x1xf32>
    %22 = tpu.matmul %0, %3, %cst_10 {dimension_numbers = #tpu.dot_dimension_numbers<[1], [1], [0], [0], [0, 0, 1, 0], [], []>} : vector<8x16xf32>, vector<1x16xf32>, vector<8x1xf32> -> vector<8x1xf32>
    %23 = vector.shape_cast %3 : vector<1x16xf32> to vector<1x1x16xf32>
    %cst_11 = arith.constant dense<0.000000e+00> : vector<1xf32>
    %24 = vector.multi_reduction <add>, %23, %cst_11 [1, 2] : vector<1x1x16xf32> to vector<1xf32>
    %25 = vector.shape_cast %24 : vector<1xf32> to vector<1x1x1xf32>
    %26 = vector.extract %25[0, 0, 0] : f32 from vector<1x1x1xf32>
    %27 = vector.broadcast %26 : f32 to vector<8x1xf32>
    %28 = arith.mulf %12, %27 : vector<8x1xf32>
    %29 = arith.subf %28, %22 : vector<8x1xf32>
    %cst_12 = arith.constant 0.899999976 : f32
    %30 = vector.broadcast %cst_12 : f32 to vector<8x1xf32>
    %31 = arith.mulf %30, %21 : vector<8x1xf32>
    %cst_13 = arith.constant 6.250000e-03 : f32
    %32 = vector.broadcast %cst_13 : f32 to vector<8x1xf32>
    %33 = arith.mulf %32, %29 : vector<8x1xf32>
    %34 = arith.addf %31, %33 : vector<8x1xf32>
    %cst_14 = arith.constant 0.000000e+00 : f32
    %35 = vector.broadcast %cst_14 : f32 to vector<8x1xf32>
    %36 = arith.subf %35, %34 : vector<8x1xf32>
    %37 = math.exp %36 : vector<8x1xf32>
    %cst_15 = arith.constant 1.000000e+00 : f32
    %38 = vector.broadcast %cst_15 : f32 to vector<8x1xf32>
    %39 = arith.subf %38, %37 : vector<8x1xf32>
    %40 = arith.mulf %39, %39 : vector<8x1xf32>
    %cst_16 = arith.constant 1.000000e+00 : f32
    %41 = vector.broadcast %cst_16 : f32 to vector<8x1xf32>
    %42 = arith.mulf %41, %40 : vector<8x1xf32>
    %43 = arith.mulf %42, %34 : vector<8x1xf32>
    %c8_i32 = arith.constant 8 : i32
    %44 = arith.muli %arg0, %c8_i32 : i32
    %45 = tpu.iota {dimensions = array<i32: 0>} : vector<8x1xi32>
    %46 = vector.broadcast %44 : i32 to vector<8x1xi32>
    %47 = arith.addi %46, %45 : vector<8x1xi32>
    %c8_i32_17 = arith.constant 8 : i32
    %48 = vector.broadcast %c8_i32_17 : i32 to vector<8x1xi32>
    %49 = arith.cmpi slt, %47, %48 : vector<8x1xi32>
    %cst_18 = arith.constant 0.000000e+00 : f32
    %50 = vector.broadcast %cst_18 : f32 to vector<8x1xf32>
    %51 = arith.select %49, %43, %50 : vector<8x1xi1>, vector<8x1xf32>
    %52 = vector.shape_cast %51 : vector<8x1xf32> to vector<1x8x1xf32>
    %cst_19 = arith.constant dense<0.000000e+00> : vector<1xf32>
    %53 = vector.multi_reduction <add>, %52, %cst_19 [1, 2] : vector<1x8x1xf32> to vector<1xf32>
    %54 = vector.shape_cast %53 : vector<1xf32> to vector<1x1x1xf32>
    %55 = vector.extract %54[0, 0, 0] : f32 from vector<1x1x1xf32>
    %56 = vector.broadcast %55 : f32 to vector<1x1x128xf32>
    %c0_20 = arith.constant 0 : index
    %c0_21 = arith.constant 0 : index
    %c0_22 = arith.constant 0 : index
    %57 = vector.load %arg5[%c0_20, %c0_21, %c0_22] : memref<1x1x128xf32, #tpu.memory_space<vmem>>, vector<1x1x128xf32>
    tpu.vector_store %arg5[%c0_20, %c0_21, %c0_22], %56 {strides = array<i32>} : memref<1x1x128xf32, #tpu.memory_space<vmem>>, vector<1x1x128xf32>,
    return
  }
  func.func @transform_0(%arg0: i32) -> (i32, i32) {
    %c0_i32 = arith.constant 0 : i32
    %c0_i32_0 = arith.constant 0 : i32
    return %arg0, %c0_i32 : i32, i32
  }
  func.func @transform_1(%arg0: i32) -> (i32, i32) {
    %c0_i32 = arith.constant 0 : i32
    %c0_i32_0 = arith.constant 0 : i32
    return %arg0, %c0_i32 : i32, i32
  }
  func.func @transform_2(%arg0: i32) -> (i32, i32) {
    %c0_i32 = arith.constant 0 : i32
    %c0_i32_0 = arith.constant 0 : i32
    return %arg0, %c0_i32 : i32, i32
  }
  func.func @transform_3(%arg0: i32) -> (i32, i32) {
    %c0_i32 = arith.constant 0 : i32
    %c0_i32_0 = arith.constant 0 : i32
    %c0_i32_1 = arith.constant 0 : i32
    return %c0_i32, %c0_i32_0 : i32, i32
  }
  func.func @transform_4(%arg0: i32) -> (i32, i32, i32) {
    %c0_i32 = arith.constant 0 : i32
    %c0_i32_0 = arith.constant 0 : i32
    %c0_i32_1 = arith.constant 0 : i32
    return %arg0, %c0_i32, %c0_i32_0 : i32, i32, i32
  }
}

</mosaic_0001>

<bundles_post_ra>
// kernel: tpu_custom_call.1
= control target key start
LH: loop header
LB: loop body
LE: loop exit
PB: predicated region body
PF: predicated region fallthrough
CT: control target
= control target key end

     0   :  { %vm22_vm0 = vcmask 130048   ;;  %v151_v3 = vmov 0   ;;  %vm57_vm1 = vcmask 122880   ;;  %s206_s0 = inlined_call_operand.vmem [shape: f32[8,16], index: 0, kind: input, shape index: {}]   ;;  %s207_s1 = inlined_call_operand.vmem [shape: s32[8,1], index: 1, kind: input, shape index: {}]   ;;  %s208_s2 = inlined_call_operand.vmem [shape: f32[8,1], index: 2, kind: input, shape index: {}]   ;;  %s209_s3 = inlined_call_operand.vmem [shape: f32[1,16], index: 3, kind: input, shape index: {}]   ;;  %s210_s4 = inlined_call_operand.hbm [shape: f32[1,1,128], index: 4, kind: output, shape index: {}]  }
   0x1   :  { %v18_v0 = vld [vmem:[%s206_s0] sm:$0xff]  ;;  %120 = vset.pattern.permute.xlu0 %v151_v3 }
   0x2   :  { %v21_v1 = vld [vmem:[%s209_s3] sm:$0x1]  ;;  %v23_v2 = vsel %vm22_vm0, %v18_v0, -inf }
   0x3   :  { %9 = vsyncpa [#allocation3], 0  ;;  %24 = vmax.xlane.f32.xlu0 %v23_v2  ;;  %v58_v4 = vsel %vm57_vm1, %v21_v1, 0.0  ;;  %v19_v5 = vld [vmem:[%s207_s1] sm:$0xff]  ;;  %v35_v9 = vlaneseq  ;;  %vm87_vm3 = vcmask 7168  }
   0x4   :  { %59 = vadd.xlane.f32.xlu1 %v58_v4  ;;  %v20_v34 = vld [vmem:[%s208_s2] sm:$0xff]  ;;  %s152_s2 = smov [#allocation2]  }
   0x5   :  { %v49_v13 = vshrl.u32 %v35_v9, 7  ;;  %v36_v15 = vand.u32 127, %v35_v9  ;;  %s106_s21 = sshll.u32 %s152_s2, 4  ;;  %s107_s21 = int_to_ptr.vmem [resolvable:$true] %s106_s21 }
   0x6   :  { %s127_s23 = scalar_lea.vmem %s107_s21, 16  ;;  %s131_s24 = scalar_lea.vmem %s107_s21, 32 }
   0x7   :  { %v50_v18 = vsub.s32 0, %v49_v13  ;;  %p128_p0 = scmp.ne.s32.totalorder %s107_s21, %s127_s23  ;;  %p132_p1 = scmp.lt.s32.totalorder %s107_s21, %s107_s21 }
   0x8   :  { %p133_p2 = scmp.lt.s32.totalorder %s131_s24, %s127_s23 }
   0x9   :  { %v51_v21 = vrot.slane %v21_v1, %v50_v18 }
   0xa   :  { %p134_p3 = por %p133_p2, %p132_p1 }
   0xb   :  { %v53_v26 = vmul.f32 %v51_v21, %v18_v0 }
   0xc   :  { %p135_p4 = pnand %p134_p3, %p128_p0 }
   0xd   :  { %v54_v27 = vsel %vm22_vm0, %v53_v26, 0.0 }
  0x19   :  { %38 = vperm.xlu0 %120, %v19_v5  }
  0x90   :  { %v25_v6 = vpop.xlane.xlu0 %24 }
  0x91   :  { %v26_v7 = vsub.f32 %v18_v0, %v25_v6  ;;  %v60_v8 = vpop.xlane.xlu1 %59 }
  0x92   :  { %v61_v10 = vrot.slane %v60_v8, 4 }
  0x93   :  { %v27_v11 = vmul.f32 1.442695, %v26_v7 }
  0x94   :  { %v62_v12 = vadd.f32 %v61_v10, %v60_v8 }
  0x95   :  { %121 = vpow2.f32 %v27_v11 }
  0x96   :  { %v63_v14 = vrot.slane %v62_v12, 2 }
  0x98   :  { %v64_v16 = vadd.f32 %v63_v14, %v62_v12  ;;  %v39_v17 = vpop.permute.xlu0 %38 }
  0x99   :  { %vm40_vm2 = vcmp.eq.s32.totalorder %v36_v15, %v39_v17 }
  0x9a   :  { %v65_v19 = vrot.slane %v64_v16, 1  ;;  %v41_v23 = vsel %vm40_vm2, %v18_v0, 0.0 }
  0x9b   :  { %v42_v25 = vsel %vm22_vm0, %v41_v23, 0.0 }
  0x9c   :  { %v66_v20 = vadd.f32 %v65_v19, %v64_v16 }
  0x9e   :  { %114 = vpush %v66_v20 }
  0x9f   :  { %v122_v22 = vpop.eup %121 }
  0xa0   :  { %v29_v24 = vsel %vm22_vm0, %v122_v22, 0.0 }
  0xa1   :  { %30 = vadd.xlane.f32.xlu1 %v29_v24 }
  0xa5   :  { %43 = vadd.xlane.f32.xlu1 %v42_v25 }
  0xa9   :  { %55 = vadd.xlane.f32.xlu1 %v54_v27 }
  0xcf   :  { %s115_s0 = spop %114 }
  0xd0   :  { %v68_v33 = vstv %s115_s0 }
 0x12e   :  { %v31_v28 = vpop.xlane.xlu1 %30 }
 0x12f   :  { %123 = vlog2.f32 %v31_v28 }
 0x132   :  { %v44_v29 = vpop.xlane.xlu1 %43 }
 0x136   :  { %v56_v35 = vpop.xlane.xlu1 %55 }
 0x139   :  { %v124_v30 = vpop.eup %123 }
 0x13a   :  { %v33_v31 = vmul.f32 0.6931472, %v124_v30 }
 0x13c   :  { %v34_v32 = vadd.f32 %v33_v31, %v25_v6 }
 0x13e   :  { %v69_v36 = vmul.f32 %v68_v33, %v34_v32  ;;  %v45_v37 = vsub.f32 %v34_v32, %v44_v29 }
 0x140   :  { %v46_v38 = vmul.f32 %v45_v37, %v20_v34  ;;  %v70_v39 = vsub.f32 %v69_v36, %v56_v35 }
 0x142   :  { %v71_v40 = vmul.f32 0.9, %v46_v38  ;;  %v72_v41 = vmul.f32 0.00625, %v70_v39 }
 0x144   :  { %v73_v42 = vadd.f32 %v72_v41, %v71_v40 }
 0x146   :  { %v74_v43 = vsub.f32 0.0, %v73_v42 }
 0x148   :  { %v75_v44 = vmul.f32 1.442695, %v74_v43 }
 0x14a   :  { %125 = vpow2.f32 %v75_v44 }
 0x154   :  { %v126_v45 = vpop.eup %125 }
 0x155   :  { %v77_v46 = vsub.f32 1.0, %v126_v45 }
 0x157   :  { %v78_v47 = vmul.f32 %v77_v46, %v77_v46 }
 0x159   :  { %v79_v48 = vmul.f32 %v78_v47, %v73_v42 }
 0x15b   :  { %v88_v49 = vsel %vm87_vm3, %v79_v48, 0.0 }
 0x15c   :  { %89 = vadd.xlane.f32.xlu1 %v88_v49 }
 0x1e9   :  { %v90_v50 = vpop.xlane.xlu1 %89 }
 0x1ea   :  { %v91_v51 = vrot.slane %v90_v50, 4 }
 0x1ec   :  { %v92_v52 = vadd.f32 %v91_v51, %v90_v50 }
 0x1ee   :  { %v93_v53 = vrot.slane %v92_v52, 2 }
 0x1f0   :  { %v94_v54 = vadd.f32 %v93_v53, %v92_v52 }
 0x1f2   :  { %v95_v55 = vrot.slane %v94_v54, 1 }
 0x1f4   :  { %v96_v56 = vadd.f32 %v95_v55, %v94_v54 }
 0x1f6   :  { %116 = vpush %v96_v56 }
 0x227   :  { %s117_s22 = spop %116 }
 0x228   :  { %v98_v57 = vstv %s117_s22 }
 0x229   :  { %99 = vst [vmem:[#allocation2] sm:$0x1] %v98_v57 }
 0x22a   :  { %138 = shalt.err (!%p135_p4)
}
 0x22b   :  { %s139_s27 = scalar_lea.hbm %s210_s4, 16 }
 0x22c   :  { %p140_p5 = scmp.ne.s32.totalorder %s210_s4, %s139_s27  ;;  %p143_p6 = scmp.lt.u32.totalorder %s139_s27, %s210_s4 }
 0x22e   :  { %p145_p7 = pnand %p143_p6, %p140_p5 }
 0x230   :  { %148 = shalt.err (!%p145_p7)
}
 0x231   :  { %109 = dma.vmem_to_hbm [thread:$0]  %s107_s21, 16, %s210_s4, [#allocation3]  }
 0x232   :  { %149 = dma.done.wait [#allocation3], 16  }
 0x233   :  { %150 = vsyncadd [#allocation3], 4294967280 }
 0x234   :  { %113 = vsyncpa [#allocation3], 1 }

</bundles_post_ra>
